<compile_context>
chip_gen: v6e
topology: v6e:2x2x1
jax: 0.10.0
libtpu: 0.0.40
codegen_flags: <defaults>
</compile_context>

<pallas_src>
import jax
import jax.numpy as jnp
from jax.experimental import pallas as pl
from jax.experimental.pallas import tpu as pltpu


def _round_up(x, m):
    return ((x + m - 1) // m) * m


def _qof_mcp_kernel(state_ref, ra_ref,
                    w1_ref, b1_ref, w2_ref, b2_ref,
                    w3s_ref, w3ra_ref, b3_ref,
                    w4_ref, b4_ref,
                    q_ref):
    bf16 = jnp.bfloat16
    f32 = jnp.float32

    # robot_state_mlp: Linear -> ReLU -> Linear, then the outer relu from forward()
    x = state_ref[...].astype(bf16)
    h1 = jnp.dot(x, w1_ref[...], preferred_element_type=f32) + b1_ref[...]
    h1 = jnp.maximum(h1, 0.0)
    s = jnp.dot(h1.astype(bf16), w2_ref[...], preferred_element_type=f32) + b2_ref[...]
    s = jnp.maximum(s, 0.0)            # relu(self.robot_state_mlp(...))

    # head: cat([state, relative_target, action]) @ W3 + b3, as split matmuls
    # (exactly equivalent to concat-then-matmul; rel/act halves fused host-side).
    # The two dots are adjacent and summed so the second can accumulate in place
    # (MRB on v7x) before the bias add.
    ra = ra_ref[...].astype(bf16)
    h2 = (jnp.dot(s.astype(bf16), w3s_ref[...], preferred_element_type=f32)
          + jnp.dot(ra, w3ra_ref[...], preferred_element_type=f32)) + b3_ref[...]
    h2 = jnp.maximum(h2, 0.0)

    # 256 -> 1 output layer: VPU multiply + lane reduce (avoids an MXU pass
    # whose result would have a single useful column).
    q = jnp.sum(h2 * w4_ref[...], axis=-1, keepdims=True) + b4_ref[...]
    q_ref[...] = q.astype(q_ref.dtype)


def _vmem_capacity_bytes():
    """Generation-aware VMEM capacity; conservative (v7x) fallback."""
    try:
        info = pltpu.get_tpu_info()
        cap = getattr(info, "vmem_capacity_bytes", None)
        if cap:
            return int(cap)
    except Exception:
        pass
    return 64 * 1024 * 1024


def _vmem_estimate_bytes(tm, ds, dra, params):
    """Generous per-grid-step VMEM working-set estimate (bytes)."""
    w_bytes = sum(int(v.size) * v.dtype.itemsize for v in params.values())
    h_state = params["w1"].shape[1]
    out_state = params["w2"].shape[1]
    h_head = params["w3s"].shape[1]
    stream = 2 * tm * 4 * (ds + dra + 1)                        # double-buffered row tiles
    inter = tm * (4 * (h_state + out_state + 2 * h_head)        # f32 intermediates
                  + 2 * (ds + dra + h_state + out_state))       # bf16 operand copies
    return w_bytes + stream + 2 * inter + (4 << 20)             # + headroom


def qof_mcp_forward(state, relative_target, action, params, *, block_rows=2048):
    """state: [..., Ds]; relative_target: [..., Dr]; action: [..., Da].
    All share the same leading dims; returns q with those leading dims."""
    lead_shape = state.shape[:-1]
    n = 1
    for d in lead_shape:
        n *= d
    ds = state.shape[-1]
    dr = relative_target.shape[-1]
    da = action.shape[-1]
    dra = dr + da

    state_flat = state.reshape(n, ds)
    ra_flat = jnp.concatenate(
        [relative_target.reshape(n, dr), action.reshape(n, da)], axis=-1)

    # Row tiling: bf16 sublane-pair (16) granularity when possible, 8 for tiny
    # batches. No host-side pad of the activations -- a partial last block is
    # handled by Pallas block padding and its rows are sliced off afterwards.
    n_eff = max(n, 1)
    gran = 16 if n_eff >= 16 else 8
    tm = min(block_rows, _round_up(n_eff, gran))

    # v7x megacore: ensure the "parallel" row axis has >= 2 grid steps when
    # there is enough work so both TensorCores get a share.
    if n_eff >= 256 and pl.cdiv(n_eff, tm) < 2:
        tm = _round_up(pl.cdiv(n_eff, 2), gran)
    num_tiles = pl.cdiv(n_eff, tm)
    # Prefer an even step count for balanced 2-core sharding when cheap to do.
    if num_tiles > 1 and num_tiles % 2 == 1 and n_eff >= 256:
        tm_alt = _round_up(pl.cdiv(n_eff, num_tiles + 1), gran)
        if tm_alt >= gran and pl.cdiv(n_eff, tm_alt) % 2 == 0:
            tm = tm_alt
            num_tiles = pl.cdiv(n_eff, tm)

    grid = (num_tiles,)
    n_out = num_tiles * tm   # output covers any padded tail rows; sliced below

    def row_spec(d):
        return pl.BlockSpec((tm, d), lambda i: (i, 0))

    # Weights/biases: whole array resident in VMEM, no per-step pipelining and
    # no double-buffering (they are identical across all grid steps).
    const_spec = pl.BlockSpec(memory_space=pltpu.MemorySpace.VMEM)

    w_args = (params["w1"], params["b1"], params["w2"], params["b2"],
              params["w3s"], params["w3ra"], params["b3"],
              params["w4"], params["b4"])
    in_specs = [row_spec(ds), row_spec(dra)] + [const_spec] * len(w_args)

    h_state = params["w1"].shape[1]
    out_state = params["w2"].shape[1]
    h_head = params["w3s"].shape[1]
    flops = 2 * n_eff * (ds * h_state + h_state * out_state
                         + out_state * h_head + dra * h_head + h_head)
    w_bytes = sum(int(a.size) * a.dtype.itemsize for a in w_args)
    bytes_accessed = 4 * n_eff * (ds + dra + 1) + w_bytes

    vmem_cap = _vmem_capacity_bytes()
    vmem_limit = int(min(max(_vmem_estimate_bytes(tm, ds, dra, params),
                             32 * 1024 * 1024),
                         (3 * vmem_cap) // 4))

    q = pl.pallas_call(
        _qof_mcp_kernel,
        out_shape=jax.ShapeDtypeStruct((n_out, 1), jnp.float32),
        grid=grid,
        in_specs=in_specs,
        out_specs=pl.BlockSpec((tm, 1), lambda i: (i, 0)),
        compiler_params=pltpu.CompilerParams(
            dimension_semantics=("parallel",),
            vmem_limit_bytes=vmem_limit),
        cost_estimate=pl.CostEstimate(flops=int(flops), transcendentals=0,
                                      bytes_accessed=int(bytes_accessed)),
    )(state_flat, ra_flat, *w_args)

    return q[:n, 0].reshape(lead_shape)   # squeeze(-1) + restore_leading_dims


def init_params(key, state_dim, rel_dim, action_dim,
                h_state=512, out_state=256, h_head=256):
    """Deterministic synthetic parameters.
    Weight layout is (in_features, out_features): y = x @ W + b (equivalent to
    torch Linear with W = W_torch.T). MXU weights are bf16; biases and the
    256->1 row vector (used on the VPU) stay f32."""
    ks = jax.random.split(key, 9)
    scale = 0.05

    def w(k, shape):
        return (scale * jax.random.normal(k, shape, jnp.float32)).astype(jnp.bfloat16)

    def b(k, shape):
        return 0.01 * jax.random.normal(k, shape, jnp.float32)

    return {
        "w1": w(ks[0], (state_dim, h_state)),
        "b1": b(ks[1], (1, h_state)),
        "w2": w(ks[2], (h_state, out_state)),
        "b2": b(ks[3], (1, out_state)),
        "w3s": w(ks[4], (out_state, h_head)),
        "w3ra": w(ks[5], (rel_dim + action_dim, h_head)),   # fused rel+act slice of W3
        "b3": b(ks[6], (1, h_head)),
        "w4": scale * jax.random.normal(ks[7], (1, h_head), jnp.float32),
        "b4": b(ks[8], (1, 1)),
    }


def _reference_forward(state, rel, act, p):
    """Pure-JAX reference with matching bf16-operand / f32-accumulate numerics."""
    lead = state.shape[:-1]
    n = 1
    for d in lead:
        n *= d
    bf16, f32 = jnp.bfloat16, jnp.float32
    x = state.reshape(n, -1).astype(bf16)
    h1 = jnp.maximum(jnp.dot(x, p["w1"], preferred_element_type=f32) + p["b1"], 0.0)
    s = jnp.maximum(jnp.dot(h1.astype(bf16), p["w2"],
                            preferred_element_type=f32) + p["b2"], 0.0)
    ra = jnp.concatenate([rel.reshape(n, -1), act.reshape(n, -1)], axis=-1).astype(bf16)
    h2 = (jnp.dot(s.astype(bf16), p["w3s"], preferred_element_type=f32)
          + jnp.dot(ra, p["w3ra"], preferred_element_type=f32)
          + p["b3"])
    h2 = jnp.maximum(h2, 0.0)
    q = jnp.sum(h2 * p["w4"], axis=-1, keepdims=True) + p["b4"]
    return q.reshape(lead)


if __name__ == "__main__":
    # Small shapes consistent with the module's [T*B, H] convention.
    T, B = 2, 4
    STATE_DIM = 32     # observation_shape.state[0]
    REL_DIM = 8        # observation_shape.goal.relative_target[0]
    ACTION_DIM = 8     # action_size

    key = jax.random.PRNGKey(0)
    k_state, k_rel, k_act, k_params = jax.random.split(key, 4)

    state = jax.random.normal(k_state, (T, B, STATE_DIM), jnp.float32)
    relative_target = jax.random.normal(k_rel, (T, B, REL_DIM), jnp.float32)
    action = jax.random.normal(k_act, (T, B, ACTION_DIM), jnp.float32)
    params = init_params(k_params, STATE_DIM, REL_DIM, ACTION_DIM)

    q = qof_mcp_forward(state, relative_target, action, params)
    q = jax.block_until_ready(q)

    q_ref = _reference_forward(state, relative_target, action, params)
    assert q.shape == (T, B), f"unexpected output shape {q.shape}"
    assert jnp.allclose(q, q_ref, atol=5e-3, rtol=5e-3), "kernel mismatch vs reference"

    print("KERNEL_OK")
</pallas_src>

<mosaic_0001>
module attributes {stable_mosaic.version = 11 : i64} {
  func.func @_qof_mcp_kernel(%arg0: i32, %arg1: memref<8x32xf32, #tpu.memory_space<vmem>>, %arg2: memref<8x16xf32, #tpu.memory_space<vmem>>, %arg3: memref<32x512xbf16, #tpu.memory_space<vmem>>, %arg4: memref<1x512xf32, #tpu.memory_space<vmem>>, %arg5: memref<512x256xbf16, #tpu.memory_space<vmem>>, %arg6: memref<1x256xf32, #tpu.memory_space<vmem>>, %arg7: memref<256x256xbf16, #tpu.memory_space<vmem>>, %arg8: memref<16x256xbf16, #tpu.memory_space<vmem>>, %arg9: memref<1x256xf32, #tpu.memory_space<vmem>>, %arg10: memref<1x256xf32, #tpu.memory_space<vmem>>, %arg11: memref<1x1xf32, #tpu.memory_space<vmem>>, %arg12: memref<8x1xf32, #tpu.memory_space<vmem>>) attributes {dimension_semantics = [#tpu.dimension_semantics<parallel>], iteration_bounds = array<i64: 1>, scalar_prefetch = 0 : i64, scratch_operands = 0 : i64, tpu.core_type = #tpu.core_type<tc>, window_params = [{transform_indices = @transform_0, window_bounds = array<i64: 8, 32>}, {transform_indices = @transform_1, window_bounds = array<i64: 8, 16>}, {pipeline_mode = #tpu.pipeline_mode<synchronous>, transform_indices = @transform_2, window_bounds = array<i64: 32, 512>}, {pipeline_mode = #tpu.pipeline_mode<synchronous>, transform_indices = @transform_3, window_bounds = array<i64: 1, 512>}, {pipeline_mode = #tpu.pipeline_mode<synchronous>, transform_indices = @transform_4, window_bounds = array<i64: 512, 256>}, {pipeline_mode = #tpu.pipeline_mode<synchronous>, transform_indices = @transform_5, window_bounds = array<i64: 1, 256>}, {pipeline_mode = #tpu.pipeline_mode<synchronous>, transform_indices = @transform_6, window_bounds = array<i64: 256, 256>}, {pipeline_mode = #tpu.pipeline_mode<synchronous>, transform_indices = @transform_7, window_bounds = array<i64: 16, 256>}, {pipeline_mode = #tpu.pipeline_mode<synchronous>, transform_indices = @transform_8, window_bounds = array<i64: 1, 256>}, {pipeline_mode = #tpu.pipeline_mode<synchronous>, transform_indices = @transform_9, window_bounds = array<i64: 1, 256>}, {pipeline_mode = #tpu.pipeline_mode<synchronous>, transform_indices = @transform_10, window_bounds = array<i64: 1, 1>}, {transform_indices = @transform_11, window_bounds = array<i64: 8, 1>}]} {
    %c0 = arith.constant 0 : index
    %c0_0 = arith.constant 0 : index
    %0 = vector.load %arg1[%c0, %c0_0] : memref<8x32xf32, #tpu.memory_space<vmem>>, vector<8x32xf32>
    %1 = arith.truncf %0 : vector<8x32xf32> to vector<8x32xbf16>
    %c0_1 = arith.constant 0 : index
    %c0_2 = arith.constant 0 : index
    %2 = vector.load %arg3[%c0_1, %c0_2] : memref<32x512xbf16, #tpu.memory_space<vmem>>, vector<32x512xbf16>
    %cst = arith.constant dense<0.000000e+00> : vector<8x512xf32>
    %3 = tpu.matmul %1, %2, %cst {dimension_numbers = #tpu.dot_dimension_numbers<[1], [0], [0], [1], [0, 0, 1, 1], [], []>} : vector<8x32xbf16>, vector<32x512xbf16>, vector<8x512xf32> -> vector<8x512xf32>
    %c0_3 = arith.constant 0 : index
    %c0_4 = arith.constant 0 : index
    %4 = vector.load %arg4[%c0_3, %c0_4] : memref<1x512xf32, #tpu.memory_space<vmem>>, vector<1x512xf32>
    %5 = vector.broadcast %4 : vector<1x512xf32> to vector<8x512xf32>
    %6 = arith.addf %3, %5 : vector<8x512xf32>
    %cst_5 = arith.constant 0.000000e+00 : f32
    %7 = vector.broadcast %cst_5 : f32 to vector<8x512xf32>
    %8 = arith.maximumf %6, %7 : vector<8x512xf32>
    %9 = arith.truncf %8 : vector<8x512xf32> to vector<8x512xbf16>
    %c0_6 = arith.constant 0 : index
    %c0_7 = arith.constant 0 : index
    %10 = vector.load %arg5[%c0_6, %c0_7] : memref<512x256xbf16, #tpu.memory_space<vmem>>, vector<512x256xbf16>
    %cst_8 = arith.constant dense<0.000000e+00> : vector<8x256xf32>
    %11 = tpu.matmul %9, %10, %cst_8 {dimension_numbers = #tpu.dot_dimension_numbers<[1], [0], [0], [1], [0, 0, 1, 1], [], []>} : vector<8x512xbf16>, vector<512x256xbf16>, vector<8x256xf32> -> vector<8x256xf32>
    %c0_9 = arith.constant 0 : index
    %c0_10 = arith.constant 0 : index
    %12 = vector.load %arg6[%c0_9, %c0_10] : memref<1x256xf32, #tpu.memory_space<vmem>>, vector<1x256xf32>
    %13 = vector.broadcast %12 : vector<1x256xf32> to vector<8x256xf32>
    %14 = arith.addf %11, %13 : vector<8x256xf32>
    %cst_11 = arith.constant 0.000000e+00 : f32
    %15 = vector.broadcast %cst_11 : f32 to vector<8x256xf32>
    %16 = arith.maximumf %14, %15 : vector<8x256xf32>
    %c0_12 = arith.constant 0 : index
    %c0_13 = arith.constant 0 : index
    %17 = vector.load %arg2[%c0_12, %c0_13] : memref<8x16xf32, #tpu.memory_space<vmem>>, vector<8x16xf32>
    %18 = arith.truncf %17 : vector<8x16xf32> to vector<8x16xbf16>
    %19 = arith.truncf %16 : vector<8x256xf32> to vector<8x256xbf16>
    %c0_14 = arith.constant 0 : index
    %c0_15 = arith.constant 0 : index
    %20 = vector.load %arg7[%c0_14, %c0_15] : memref<256x256xbf16, #tpu.memory_space<vmem>>, vector<256x256xbf16>
    %cst_16 = arith.constant dense<0.000000e+00> : vector<8x256xf32>
    %21 = tpu.matmul %19, %20, %cst_16 {dimension_numbers = #tpu.dot_dimension_numbers<[1], [0], [0], [1], [0, 0, 1, 1], [], []>} : vector<8x256xbf16>, vector<256x256xbf16>, vector<8x256xf32> -> vector<8x256xf32>
    %c0_17 = arith.constant 0 : index
    %c0_18 = arith.constant 0 : index
    %22 = vector.load %arg8[%c0_17, %c0_18] : memref<16x256xbf16, #tpu.memory_space<vmem>>, vector<16x256xbf16>
    %cst_19 = arith.constant dense<0.000000e+00> : vector<8x256xf32>
    %23 = tpu.matmul %18, %22, %cst_19 {dimension_numbers = #tpu.dot_dimension_numbers<[1], [0], [0], [1], [0, 0, 1, 1], [], []>} : vector<8x16xbf16>, vector<16x256xbf16>, vector<8x256xf32> -> vector<8x256xf32>
    %24 = arith.addf %21, %23 : vector<8x256xf32>
    %c0_20 = arith.constant 0 : index
    %c0_21 = arith.constant 0 : index
    %25 = vector.load %arg9[%c0_20, %c0_21] : memref<1x256xf32, #tpu.memory_space<vmem>>, vector<1x256xf32>
    %26 = vector.broadcast %25 : vector<1x256xf32> to vector<8x256xf32>
    %27 = arith.addf %24, %26 : vector<8x256xf32>
    %cst_22 = arith.constant 0.000000e+00 : f32
    %28 = vector.broadcast %cst_22 : f32 to vector<8x256xf32>
    %29 = arith.maximumf %27, %28 : vector<8x256xf32>
    %c0_23 = arith.constant 0 : index
    %c0_24 = arith.constant 0 : index
    %30 = vector.load %arg10[%c0_23, %c0_24] : memref<1x256xf32, #tpu.memory_space<vmem>>, vector<1x256xf32>
    %31 = vector.broadcast %30 : vector<1x256xf32> to vector<8x256xf32>
    %32 = arith.mulf %29, %31 : vector<8x256xf32>
    %cst_25 = arith.constant dense<0.000000e+00> : vector<8xf32>
    %33 = vector.multi_reduction <add>, %32, %cst_25 [1] : vector<8x256xf32> to vector<8xf32>
    %34 = vector.shape_cast %33 : vector<8xf32> to vector<8x1xf32>
    %c0_26 = arith.constant 0 : index
    %c0_27 = arith.constant 0 : index
    %35 = vector.load %arg11[%c0_26, %c0_27] : memref<1x1xf32, #tpu.memory_space<vmem>>, vector<1x1xf32>
    %36 = vector.broadcast %35 : vector<1x1xf32> to vector<8x1xf32>
    %37 = arith.addf %34, %36 : vector<8x1xf32>
    %c0_28 = arith.constant 0 : index
    %c0_29 = arith.constant 0 : index
    %38 = vector.load %arg12[%c0_28, %c0_29] : memref<8x1xf32, #tpu.memory_space<vmem>>, vector<8x1xf32>
    tpu.vector_store %arg12[%c0_28, %c0_29], %37 {strides = array<i32>} : memref<8x1xf32, #tpu.memory_space<vmem>>, vector<8x1xf32>,
    return
  }
  func.func @transform_0(%arg0: i32) -> (i32, i32) {
    %c0_i32 = arith.constant 0 : i32
    %c0_i32_0 = arith.constant 0 : i32
    return %arg0, %c0_i32 : i32, i32
  }
  func.func @transform_1(%arg0: i32) -> (i32, i32) {
    %c0_i32 = arith.constant 0 : i32
    %c0_i32_0 = arith.constant 0 : i32
    return %arg0, %c0_i32 : i32, i32
  }
  func.func @transform_2(%arg0: i32) -> (i32, i32) {
    %c0_i32 = arith.constant 0 : i32
    %c0_i32_0 = arith.constant 0 : i32
    %c0_i32_1 = arith.constant 0 : i32
    return %c0_i32, %c0_i32_0 : i32, i32
  }
  func.func @transform_3(%arg0: i32) -> (i32, i32) {
    %c0_i32 = arith.constant 0 : i32
    %c0_i32_0 = arith.constant 0 : i32
    %c0_i32_1 = arith.constant 0 : i32
    return %c0_i32, %c0_i32_0 : i32, i32
  }
  func.func @transform_4(%arg0: i32) -> (i32, i32) {
    %c0_i32 = arith.constant 0 : i32
    %c0_i32_0 = arith.constant 0 : i32
    %c0_i32_1 = arith.constant 0 : i32
    return %c0_i32, %c0_i32_0 : i32, i32
  }
  func.func @transform_5(%arg0: i32) -> (i32, i32) {
    %c0_i32 = arith.constant 0 : i32
    %c0_i32_0 = arith.constant 0 : i32
    %c0_i32_1 = arith.constant 0 : i32
    return %c0_i32, %c0_i32_0 : i32, i32
  }
  func.func @transform_6(%arg0: i32) -> (i32, i32) {
    %c0_i32 = arith.constant 0 : i32
    %c0_i32_0 = arith.constant 0 : i32
    %c0_i32_1 = arith.constant 0 : i32
    return %c0_i32, %c0_i32_0 : i32, i32
  }
  func.func @transform_7(%arg0: i32) -> (i32, i32) {
    %c0_i32 = arith.constant 0 : i32
    %c0_i32_0 = arith.constant 0 : i32
    %c0_i32_1 = arith.constant 0 : i32
    return %c0_i32, %c0_i32_0 : i32, i32
  }
  func.func @transform_8(%arg0: i32) -> (i32, i32) {
    %c0_i32 = arith.constant 0 : i32
    %c0_i32_0 = arith.constant 0 : i32
    %c0_i32_1 = arith.constant 0 : i32
    return %c0_i32, %c0_i32_0 : i32, i32
  }
  func.func @transform_9(%arg0: i32) -> (i32, i32) {
    %c0_i32 = arith.constant 0 : i32
    %c0_i32_0 = arith.constant 0 : i32
    %c0_i32_1 = arith.constant 0 : i32
    return %c0_i32, %c0_i32_0 : i32, i32
  }
  func.func @transform_10(%arg0: i32) -> (i32, i32) {
    %c0_i32 = arith.constant 0 : i32
    %c0_i32_0 = arith.constant 0 : i32
    %c0_i32_1 = arith.constant 0 : i32
    return %c0_i32, %c0_i32_0 : i32, i32
  }
  func.func @transform_11(%arg0: i32) -> (i32, i32) {
    %c0_i32 = arith.constant 0 : i32
    %c0_i32_0 = arith.constant 0 : i32
    return %arg0, %c0_i32 : i32, i32
  }
}

</mosaic_0001>

<bundles_post_ra>
// kernel: tpu_custom_call.1
= control target key start
LH: loop header
LB: loop body
LE: loop exit
PB: predicated region body
PF: predicated region fallthrough
CT: control target
= control target key end

     0   :  { %s1651_s0 = inlined_call_operand.hbm [shape: f32[8,32], index: 0, kind: input, shape index: {}]   ;;  %s1652_s1 = inlined_call_operand.hbm [shape: f32[8,16], index: 1, kind: input, shape index: {}]   ;;  %s1653_s2 = inlined_call_operand.hbm [shape: bf16[32,512], index: 2, kind: input, shape index: {}]   ;;  %s1654_s3 = inlined_call_operand.vmem [shape: f32[1,512], index: 3, kind: input, shape index: {}]   ;;  %s1655_s4 = inlined_call_operand.hbm [shape: bf16[512,256], index: 4, kind: input, shape index: {}]   ;;  %s1656_s5 = inlined_call_operand.vmem [shape: f32[1,256], index: 5, kind: input, shape index: {}]   ;;  %s1657_s6 = inlined_call_operand.hbm [shape: bf16[256,256], index: 6, kind: input, shape index: {}]   ;;  %s1658_s7 = inlined_call_operand.hbm [shape: bf16[16,256], index: 7, kind: input, shape index: {}]   ;;  %s1659_s8 = inlined_call_operand.vmem [shape: f32[1,256], index: 8, kind: input, shape index: {}]   ;;  %s1660_s9 = inlined_call_operand.vmem [shape: f32[1,256], index: 9, kind: input, shape index: {}]   ;;  %s1661_s10 = inlined_call_operand.<no memory space> [shape: f32[1,1], index: 10, kind: input, shape index: {}]   ;;  %s1662_s11 = inlined_call_operand.vmem [shape: f32[8,1], index: 11, kind: output, shape index: {}]  }
   0x1   :  { %v16_v0 = vstv %s1661_s10 }
   0x2   :  { %17 = vst [vmem:[#allocation2] sm:$0x1] %v16_v0 }
   0x3   :  { %18 = vsyncpa [#allocation4], 0 }
   0x4   :  { %19 = vsyncpa [#allocation6], 0 }
   0x5   :  { %20 = vsyncpa [#allocation9], 0 }
   0x6   :  { %21 = vsyncpa [#allocation12], 0  ;;  %s1518_s19 = smov [#allocation5]   ;;  %s1519_s21 = smov [#allocation8]  }
   0x7   :  { %s38_s20 = sshll.u32 %s1518_s19, 4  ;;  %s61_s22 = sshll.u32 %s1519_s21, 4  ;;  %s39_s20 = int_to_ptr.vmem [resolvable:$true] %s38_s20  ;;  %s62_s22 = int_to_ptr.vmem [resolvable:$true] %s61_s22 }
   0x8   :  { %s1398_s23 = scalar_lea.vmem %s39_s20, 128  ;;  %p1403_p1 = scmp.lt.s32.totalorder %s39_s20, %s39_s20 }
   0x9   :  { %p1399_p0 = scmp.ne.s32.totalorder %s39_s20, %s1398_s23  ;;  %p1404_p2 = scmp.lt.s32.totalorder %s1398_s23, %s1398_s23 }
   0xb   :  { %p1405_p3 = por %p1404_p2, %p1403_p1 }
   0xd   :  { %p1406_p4 = pnand %p1405_p3, %p1399_p0 }
   0xf   :  { %1409 = shalt.err (!%p1406_p4)
}
  0x10   :  { %41 = dma.hbm_to_vmem [thread:$0]  %s1652_s1, 128, %s39_s20, [#allocation6]  }
  0x11   :  { %s1418_s25 = scalar_lea.vmem %s62_s22, 8192  ;;  %p1423_p6 = scmp.lt.s32.totalorder %s62_s22, %s62_s22 }
  0x12   :  { %p1419_p5 = scmp.ne.s32.totalorder %s62_s22, %s1418_s25  ;;  %p1424_p7 = scmp.lt.s32.totalorder %s1418_s25, %s1418_s25 }
  0x14   :  { %p1425_p8 = por %p1424_p7, %p1423_p6 }
  0x16   :  { %p1426_p9 = pnand %p1425_p8, %p1419_p5 }
  0x18   :  { %1429 = shalt.err (!%p1426_p9)
}
  0x19   :  { %s1520_s26 = smov 128   ;;  %s1521_s27 = smov 8  }
  0x1a   :  { %67 = dma.hbm_to_vmem [thread:$0]  %s1655_s4, 8192, %s62_s22, [#allocation9], %s1520_s26, %s1520_s26, %s1521_s27  }
  0x1b   :  { %s1522_s30 = smov [#allocation3]   ;;  %s1523_s13 = smov [#allocation7]  }
  0x1c   :  { %s28_s12 = sshll.u32 %s1522_s30, 4  ;;  %s47_s1 = sshll.u32 %s1523_s13, 4  ;;  %s29_s12 = int_to_ptr.vmem [resolvable:$true] %s28_s12  ;;  %s48_s1 = int_to_ptr.vmem [resolvable:$true] %s47_s1 }
  0x1d   :  { %s1438_s14 = scalar_lea.vmem %s29_s12, 128  ;;  %p1443_p11 = scmp.lt.s32.totalorder %s29_s12, %s29_s12 }
  0x1e   :  { %p1439_p10 = scmp.ne.s32.totalorder %s29_s12, %s1438_s14  ;;  %p1444_p12 = scmp.lt.s32.totalorder %s1438_s14, %s1438_s14 }
  0x20   :  { %p1445_p13 = por %p1444_p12, %p1443_p11 }
  0x22   :  { %p1446_p0 = pnand %p1445_p13, %p1439_p10 }
  0x24   :  { %1449 = shalt.err (!%p1446_p0)
}
  0x25   :  { %31 = dma.hbm_to_vmem [thread:$0]  %s1651_s0, 128, %s29_s12, [#allocation4]  }
  0x26   :  { %s1458_s17 = scalar_lea.vmem %s48_s1, 1024  ;;  %p1463_p2 = scmp.lt.s32.totalorder %s48_s1, %s48_s1 }
  0x27   :  { %p1459_p1 = scmp.ne.s32.totalorder %s48_s1, %s1458_s17  ;;  %p1464_p3 = scmp.lt.s32.totalorder %s1458_s17, %s1458_s17 }
  0x29   :  { %p1465_p4 = por %p1464_p3, %p1463_p2 }
  0x2b   :  { %p1466_p5 = pnand %p1465_p4, %p1459_p1 }
  0x2d   :  { %1469 = shalt.err (!%p1466_p5)
}
  0x2e   :  { %s1524_s4 = smov 256   ;;  %s1525_s18 = smov 16  }
  0x2f   :  { %53 = dma.hbm_to_vmem [thread:$0]  %s1653_s2, 1024, %s48_s1, [#allocation6], %s1524_s4, %s1524_s4, %s1525_s18  }
  0x30   :  { %s1526_s21 = smov [#allocation10]   ;;  %s1527_s23 = smov [#allocation11]  }
  0x31   :  { %s75_s22 = sshll.u32 %s1526_s21, 4  ;;  %s87_s24 = sshll.u32 %s1527_s23, 4  ;;  %s76_s22 = int_to_ptr.vmem [resolvable:$true] %s75_s22  ;;  %s88_s24 = int_to_ptr.vmem [resolvable:$true] %s87_s24 }
  0x32   :  { %s1478_s0 = scalar_lea.vmem %s76_s22, 4096  ;;  %p1483_p7 = scmp.lt.s32.totalorder %s76_s22, %s76_s22 }
  0x33   :  { %p1479_p6 = scmp.ne.s32.totalorder %s76_s22, %s1478_s0  ;;  %p1484_p8 = scmp.lt.s32.totalorder %s1478_s0, %s1478_s0 }
  0x35   :  { %p1485_p9 = por %p1484_p8, %p1483_p7 }
  0x37   :  { %p1486_p10 = pnand %p1485_p9, %p1479_p6 }
  0x39   :  { %1489 = shalt.err (!%p1486_p10)
}
  0x3a   :  { %81 = dma.hbm_to_vmem [thread:$0]  %s1657_s6, 4096, %s76_s22, [#allocation9], %s1520_s26, %s1520_s26, %s1521_s27  }
  0x3b   :  { %s1498_s2 = scalar_lea.vmem %s88_s24, 256  ;;  %p1503_p12 = scmp.lt.s32.totalorder %s88_s24, %s88_s24 }
  0x3c   :  { %p1499_p11 = scmp.ne.s32.totalorder %s88_s24, %s1498_s2  ;;  %p1504_p13 = scmp.lt.s32.totalorder %s1498_s2, %s1498_s2 }
  0x3e   :  { %p1505_p0 = por %p1504_p13, %p1503_p12 }
  0x40   :  { %p1506_p1 = pnand %p1505_p0, %p1499_p11 }
  0x42   :  { %1509 = shalt.err (!%p1506_p1)
}
  0x43   :  { %93 = dma.hbm_to_vmem [thread:$0]  %s1658_s7, 256, %s88_s24, [#allocation12], %s1520_s26, %s1520_s26, %s1521_s27  }
  0x44   :  { %1510 = dma.done.wait [#allocation4], 128  }
  0x45   :  { %1511 = vsyncadd [#allocation4], 4294967168 }
  0x46   :  { %1512 = dma.done.wait [#allocation6], 1152  }
  0x47   :  { %1513 = vsyncadd [#allocation6], 4294966144 }
  0x48   :  { %1514 = dma.done.wait [#allocation9], 12288  }
  0x49   :  { %1515 = vsyncadd [#allocation9], 4294955008 }
  0x4a   :  { %1516 = dma.done.wait [#allocation12], 256  }
  0x4b   :  { %1517 = vsyncadd [#allocation12], 4294967040  ;;  %v1528_v1 = vmov 0   ;;  %v1231_v2 = vld [vmem:[#allocation7 + $0x24] ss:$16 sps:$4 sm:$0xff]   ;;  %vm191_vm0 = vcmask 261120  }
  0x4c   :  { %227 = vmatprep.mubr.bf16.mxu0 %v1528_v1  ;;  %v1233_v3 = vld [vmem:[#allocation7 + $0x20] ss:$16 sps:$4 sm:$0xff]   ;;  %207 = vmatprep.subr.bf16.mxu0 %v1231_v2  ;;  %v1234_v4 = vld [vmem:[#allocation7 + $0x4] ss:$16 sps:$4 sm:$0xff]   ;;  %v1239_v7 = vld [vmem:[#allocation7 + $0x2c] ss:$16 sps:$4 sm:$0xff]  }
  0x4d   :  { %v1236_v5 = vld [vmem:[#allocation7] ss:$16 sps:$4 sm:$0xff]   ;;  %208 = vmatpush1.bf16.msra.mxu0 %v1233_v3  ;;  %v1237_v9 = vld [vmem:[#allocation7 + $0x28] ss:$16 sps:$4 sm:$0xff]   ;;  %v1242_v10 = vld [vmem:[#allocation7 + $0xc] ss:$16 sps:$4 sm:$0xff]  }
  0x4e   :  { %v119_v6 = vld [vmem:[#allocation3] sm:$0xff]  ;;  %209 = vmatprep.subr.bf16.mxu0 %v1234_v4  ;;  %v1240_v13 = vld [vmem:[#allocation7 + $0x8] ss:$16 sps:$4 sm:$0xff]   ;;  %v1258_v15 = vld [vmem:[#allocation8 + $0x164] ss:$8 sps:$4 sm:$0xff]   ;;  %vm813_vm1 = vcmask 130048  }
  0x4f   :  { %v120_v8 = vpack.c.bf16 %v119_v6, %v119_v6  ;;  %v1252_v11 = vld [vmem:[#allocation8 + $0x174] ss:$8 sps:$4 sm:$0xff]   ;;  %v1254_v12 = vld [vmem:[#allocation8 + $0x170] ss:$8 sps:$4 sm:$0xff]   ;;  %v1260_v16 = vld [vmem:[#allocation8 + $0x160] ss:$8 sps:$4 sm:$0xff]  }
  0x50   :  { %v1245_v14 = vld [vmem:[#allocation8 + $0x74] ss:$8 sps:$4 sm:$0xff]   ;;  %722 = vmatprep.subr.bf16.mxu1 %v1252_v11  ;;  %v1243_v17 = vld [vmem:[#allocation8 + $0x70] ss:$8 sps:$4 sm:$0xff]   ;;  %v1248_v19 = vld [vmem:[#allocation8 + $0x64] ss:$8 sps:$4 sm:$0xff]  }
  0x51   :  { %210 = vmatpush1.bf16.msra.mxu0 %v1236_v5  ;;  %723 = vmatpush1.bf16.msra.mxu1 %v1254_v12  ;;  %v1264_v18 = vld [vmem:[#allocation8 + $0x154] ss:$8 sps:$4 sm:$0xff]   ;;  %v1266_v20 = vld [vmem:[#allocation8 + $0x150] ss:$8 sps:$4 sm:$0xff]   ;;  %v1270_v21 = vld [vmem:[#allocation8 + $0x144] ss:$8 sps:$4 sm:$0xff]  }
  0x52   :  { %248 = vmatprep.subr.bf16.mxu0 %v1239_v7  ;;  %724 = vmatprep.subr.bf16.mxu1 %v1258_v15  ;;  %v1246_v22 = vld [vmem:[#allocation8 + $0x60] ss:$8 sps:$4 sm:$0xff]   ;;  %v1251_v23 = vld [vmem:[#allocation8 + $0x54] ss:$8 sps:$4 sm:$0xff]   ;;  %v1249_v26 = vld [vmem:[#allocation8 + $0x50] ss:$8 sps:$4 sm:$0xff]  }
  0x53   :  { %v1272_v24 = vld [vmem:[#allocation8 + $0x140] ss:$8 sps:$4 sm:$0xff]   ;;  %v1276_v25 = vld [vmem:[#allocation8 + $0x134] ss:$8 sps:$4 sm:$0xff]   ;;  %v1257_v27 = vld [vmem:[#allocation8 + $0x44] ss:$8 sps:$4 sm:$0xff]  }
  0x54   :  { %1118 = vmatmul.mubr.msk.bf16.vlgmr.msra.gmra.mxu0 %vm191_vm0, %v120_v8  ;;  %v1278_v28 = vld [vmem:[#allocation8 + $0x130] ss:$8 sps:$4 sm:$0xff]   ;;  %v1282_v29 = vld [vmem:[#allocation8 + $0x124] ss:$8 sps:$4 sm:$0xff]   ;;  %v1255_v30 = vld [vmem:[#allocation8 + $0x40] ss:$8 sps:$4 sm:$0xff]  }
  0x55   :  { %249 = vmatpush1.bf16.msra.mxu0 %v1237_v9  ;;  %268 = vmatprep.mubr.bf16.mxu0 %v1528_v1  ;;  %v1263_v31 = vld [vmem:[#allocation8 + $0x34] ss:$8 sps:$4 sm:$0xff]   ;;  %v1284_v32 = vld [vmem:[#allocation8 + $0x120] ss:$8 sps:$4 sm:$0xff]   ;;  %v1261_v34 = vld [vmem:[#allocation8 + $0x30] ss:$8 sps:$4 sm:$0xff]  }
  0x56   :  { %250 = vmatprep.subr.bf16.mxu0 %v1242_v10  ;;  %725 = vmatpush1.bf16.msra.mxu1 %v1260_v16  ;;  %v1288_v33 = vld [vmem:[#allocation8 + $0x114] ss:$8 sps:$4 sm:$0xff]   ;;  %v1269_v35 = vld [vmem:[#allocation8 + $0x24] ss:$8 sps:$4 sm:$0xff]   ;;  %v1290_v36 = vld [vmem:[#allocation8 + $0x110] ss:$8 sps:$4 sm:$0xff]  }
  0x57   :  { %726 = vmatprep.subr.bf16.mxu1 %v1264_v18  ;;  %v1294_v37 = vld [vmem:[#allocation8 + $0x104] ss:$8 sps:$4 sm:$0xff]   ;;  %v1267_v38 = vld [vmem:[#allocation8 + $0x20] ss:$8 sps:$4 sm:$0xff]   ;;  %v1275_v39 = vld [vmem:[#allocation8 + $0x14] ss:$8 sps:$4 sm:$0xff]  }
  0x58   :  { %v1296_v40 = vld [vmem:[#allocation8 + $0x100] ss:$8 sps:$4 sm:$0xff]   ;;  %v1273_v41 = vld [vmem:[#allocation8 + $0x10] ss:$8 sps:$4 sm:$0xff]   ;;  %v1300_v42 = vld [vmem:[#allocation8 + $0x1f4] ss:$8 sps:$4 sm:$0xff]  }
  0x59   :  { %251 = vmatpush1.bf16.msra.mxu0 %v1240_v13  ;;  %v1281_v43 = vld [vmem:[#allocation8 + $0x4] ss:$8 sps:$4 sm:$0xff]   ;;  %v1302_v44 = vld [vmem:[#allocation8 + $0x1f0] ss:$8 sps:$4 sm:$0xff]   ;;  %v1279_v46 = vld [vmem:[#allocation8] ss:$8 sps:$4 sm:$0xff]  }
  0x5a   :  { %681 = vmatprep.subr.bf16.mxu0 %v1245_v14  ;;  %727 = vmatpush1.bf16.msra.mxu1 %v1266_v20  ;;  %v1306_v45 = vld [vmem:[#allocation8 + $0x1e4] ss:$8 sps:$4 sm:$0xff]   ;;  %v1287_v47 = vld [vmem:[#allocation8 + $0xf4] ss:$8 sps:$4 sm:$0xff]   ;;  %v1308_v48 = vld [vmem:[#allocation8 + $0x1e0] ss:$8 sps:$4 sm:$0xff]   ;;  %v131_v14 = vlaneseq }
  0x5b   :  { %728 = vmatprep.subr.bf16.mxu1 %v1270_v21  ;;  %v1312_v49 = vld [vmem:[#allocation8 + $0x1d4] ss:$8 sps:$4 sm:$0xff]   ;;  %v1285_v50 = vld [vmem:[#allocation8 + $0xf0] ss:$8 sps:$4 sm:$0xff]   ;;  %v1293_v51 = vld [vmem:[#allocation8 + $0xe4] ss:$8 sps:$4 sm:$0xff]  }
  0x5c   :  { %1119 = vmatmul.mubr.msk.bf16.vlgmr.msra.gmra.mxu0 %vm191_vm0, %v120_v8  ;;  %v1314_v52 = vld [vmem:[#allocation8 + $0x1d0] ss:$8 sps:$4 sm:$0xff]   ;;  %v1318_v53 = vld [vmem:[#allocation8 + $0x1c4] ss:$8 sps:$4 sm:$0xff]   ;;  %v1291_v54 = vld [vmem:[#allocation8 + $0xe0] ss:$8 sps:$4 sm:$0xff]  }
  0x5d   :  { %682 = vmatpush1.bf16.msra.mxu0 %v1243_v17  ;;  %v1299_v55 = vld [vmem:[#allocation8 + $0xd4] ss:$8 sps:$4 sm:$0xff]   ;;  %v1320_v56 = vld [vmem:[#allocation8 + $0x1c0] ss:$8 sps:$4 sm:$0xff]   ;;  %v1297_v57 = vld [vmem:[#allocation8 + $0xd0] ss:$8 sps:$4 sm:$0xff]  }
  0x5e   :  { %683 = vmatprep.subr.bf16.mxu0 %v1248_v19  ;;  %729 = vmatpush1.bf16.msra.mxu1 %v1272_v24  ;;  %v1305_v58 = vld [vmem:[#allocation8 + $0xc4] ss:$8 sps:$4 sm:$0xff]   ;;  %v1303_v59 = vld [vmem:[#allocation8 + $0xc0] ss:$8 sps:$4 sm:$0xff]   ;;  %v1311_v60 = vld [vmem:[#allocation8 + $0xb4] ss:$8 sps:$4 sm:$0xff]  }
  0x5f   :  { %730 = vmatprep.subr.bf16.mxu1 %v1276_v25  ;;  %v1309_v61 = vld [vmem:[#allocation8 + $0xb0] ss:$8 sps:$4 sm:$0xff]   ;;  %v1317_v62 = vld [vmem:[#allocation8 + $0xa4] ss:$8 sps:$4 sm:$0xff]   ;;  %v1315_v63 = vld [vmem:[#allocation8 + $0xa0] ss:$8 sps:$4 sm:$0xff]  }
  0x60   :  { %v1323_v0 = vld [vmem:[#allocation8 + $0x94] ss:$8 sps:$4 sm:$0xff]   ;;  %v1321_v3 = vld [vmem:[#allocation8 + $0x90] ss:$8 sps:$4 sm:$0xff]   ;;  %v1329_v5 = vld [vmem:[#allocation8 + $0x84] ss:$8 sps:$4 sm:$0xff]  }
  0x61   :  { %684 = vmatpush1.bf16.msra.mxu0 %v1246_v22  ;;  %v1324_v2 = vld [vmem:[#allocation8 + $0x1b4] ss:$8 sps:$4 sm:$0xff]   ;;  %v1326_v4 = vld [vmem:[#allocation8 + $0x1b0] ss:$8 sps:$4 sm:$0xff]   ;;  %v1330_v6 = vld [vmem:[#allocation8 + $0x1a4] ss:$8 sps:$4 sm:$0xff]  }
  0x62   :  { %685 = vmatprep.subr.bf16.mxu0 %v1251_v23  ;;  %731 = vmatpush1.bf16.msra.mxu1 %v1278_v28  ;;  %v1327_v7 = vld [vmem:[#allocation8 + $0x80] ss:$8 sps:$4 sm:$0xff]   ;;  %v1333_v9 = vld [vmem:[#allocation8 + $0x194] ss:$8 sps:$4 sm:$0xff]   ;;  %v1335_v10 = vld [vmem:[#allocation8 + $0x190] ss:$8 sps:$4 sm:$0xff]  }
  0x63   :  { %732 = vmatprep.subr.bf16.mxu1 %v1282_v29  ;;  %v1332_v8 = vld [vmem:[#allocation8 + $0x1a0] ss:$8 sps:$4 sm:$0xff]   ;;  %v1336_v11 = vld [vmem:[#allocation8 + $0x184] ss:$8 sps:$4 sm:$0xff]   ;;  %v1341_v13 = vld [vmem:[#allocation10 + $0x74] ss:$8 sps:$4 sm:$0xff]  }
  0x64   :  { %v1338_v12 = vld [vmem:[#allocation8 + $0x180] ss:$8 sps:$4 sm:$0xff]   ;;  %v132_v15 = vshrl.u32 %v131_v14, 7  ;;  %v129_v17 = vld [vmem:[%s1654_s3] sm:$0xf]  ;;  %vm1100_vm2 = vcmask 7168  }
  0x65   :  { %686 = vmatpush1.bf16.msra.mxu0 %v1249_v26  ;;  %v1389_v14 = vld [vmem:[#allocation10 + $0x84] ss:$8 sps:$4 sm:$0xff]  }
  0x66   :  { %687 = vmatprep.subr.bf16.mxu0 %v1257_v27  ;;  %733 = vmatpush1.bf16.msra.mxu1 %v1284_v32  ;;  %v1623_v16 = vsub.s32 0, %v132_v15  ;;  %v1628_v18 = vsub.s32 1, %v132_v15  ;;  %v141_v23 = vsub.s32 2, %v132_v15  ;;  %v145_v26 = vsub.s32 3, %v132_v15  ;;  %v1387_v15 = vld [vmem:[#allocation10 + $0x80] ss:$8 sps:$4 sm:$0xff]  }
  0x67   :  { %734 = vmatprep.subr.bf16.mxu1 %v1288_v33 }
  0x68   :  { %v134_v19 = vrot.slane %v129_v17, %v1623_v16  ;;  %v138_v20 = vrot.slane %v129_v17, %v1628_v18  ;;  %v146_v33 = vrot.slane %v129_v17, %v145_v26 }
  0x69   :  { %688 = vmatpush1.bf16.msra.mxu0 %v1255_v30  ;;  %v142_v30 = vrot.slane %v129_v17, %v141_v23  ;;  %v349_v17 = vld [vmem:[%s1656_s5] sm:$0x3] }
  0x6a   :  { %689 = vmatprep.subr.bf16.mxu0 %v1263_v31  ;;  %735 = vmatpush1.bf16.msra.mxu1 %v1290_v36  ;;  %v358_v23 = vrot.slane %v349_v17, %v1628_v18 }
  0x6b   :  { %736 = vmatprep.subr.bf16.mxu1 %v1294_v37 }
  0x6d   :  { %690 = vmatpush1.bf16.msra.mxu0 %v1261_v34 }
  0x6e   :  { %691 = vmatprep.subr.bf16.mxu0 %v1269_v35  ;;  %737 = vmatpush1.bf16.msra.mxu1 %v1296_v40 }
  0x6f   :  { %738 = vmatprep.subr.bf16.mxu1 %v1300_v42 }
  0x71   :  { %692 = vmatpush1.bf16.msra.mxu0 %v1267_v38 }
  0x72   :  { %693 = vmatprep.subr.bf16.mxu0 %v1275_v39  ;;  %739 = vmatpush2.bf16.msra.mxu1 %v1302_v44  ;;  %v1339_v44 = vld [vmem:[#allocation10 + $0x70] ss:$8 sps:$4 sm:$0xff]  }
  0x73   :  { %740 = vmatprep.subr.bf16.mxu1 %v1306_v45 }
  0x75   :  { %694 = vmatpush1.bf16.msra.mxu0 %v1273_v41 }
  0x76   :  { %695 = vmatprep.subr.bf16.mxu0 %v1281_v43  ;;  %741 = vmatpush2.bf16.msra.mxu1 %v1308_v48  ;;  %v1347_v48 = vld [vmem:[#allocation10 + $0x54] ss:$8 sps:$4 sm:$0xff]  }
  0x77   :  { %742 = vmatprep.subr.bf16.mxu1 %v1312_v49  ;;  %v1345_v49 = vld [vmem:[#allocation10 + $0x50] ss:$8 sps:$4 sm:$0xff]  }
  0x79   :  { %696 = vmatpush1.bf16.msra.mxu0 %v1279_v46  ;;  %v1344_v46 = vld [vmem:[#allocation10 + $0x64] ss:$8 sps:$4 sm:$0xff]  }
  0x7a   :  { %697 = vmatprep.subr.bf16.mxu0 %v1287_v47  ;;  %743 = vmatpush2.bf16.msra.mxu1 %v1314_v52  ;;  %v1342_v47 = vld [vmem:[#allocation10 + $0x60] ss:$8 sps:$4 sm:$0xff]   ;;  %v1351_v52 = vld [vmem:[#allocation10 + $0x30] ss:$8 sps:$4 sm:$0xff]  }
  0x7b   :  { %744 = vmatprep.subr.bf16.mxu1 %v1318_v53  ;;  %v1356_v53 = vld [vmem:[#allocation10 + $0x24] ss:$8 sps:$4 sm:$0xff]  }
  0x7d   :  { %698 = vmatpush2.bf16.msra.mxu0 %v1285_v50  ;;  %v1350_v50 = vld [vmem:[#allocation10 + $0x44] ss:$8 sps:$4 sm:$0xff]  }
  0x7e   :  { %699 = vmatprep.subr.bf16.mxu0 %v1293_v51  ;;  %745 = vmatpush2.bf16.msra.mxu1 %v1320_v56  ;;  %v1353_v51 = vld [vmem:[#allocation10 + $0x34] ss:$8 sps:$4 sm:$0xff]   ;;  %v1357_v56 = vld [vmem:[#allocation10 + $0x10] ss:$8 sps:$4 sm:$0xff]  }
  0x7f   :  { %746 = vmatprep.subr.bf16.mxu1 %v1324_v2  ;;  %v1374_v2 = vld [vmem:[#allocation10 + $0xc4] ss:$8 sps:$4 sm:$0xff]  }
  0x81   :  { %700 = vmatpush2.bf16.msra.mxu0 %v1291_v54  ;;  %v1354_v54 = vld [vmem:[#allocation10 + $0x20] ss:$8 sps:$4 sm:$0xff]  }
  0x82   :  { %701 = vmatprep.subr.bf16.mxu0 %v1299_v55  ;;  %747 = vmatpush2.bf16.msra.mxu1 %v1326_v4  ;;  %v1359_v55 = vld [vmem:[#allocation10 + $0x14] ss:$8 sps:$4 sm:$0xff]  }
  0x83   :  { %748 = vmatprep.subr.bf16.mxu1 %v1330_v6  ;;  %v1377_v4 = vld [vmem:[#allocation10 + $0xb4] ss:$8 sps:$4 sm:$0xff]   ;;  %v1380_v6 = vld [vmem:[#allocation10 + $0xa4] ss:$8 sps:$4 sm:$0xff]  }
  0x85   :  { %702 = vmatpush2.bf16.msra.mxu0 %v1297_v57  ;;  %v1362_v57 = vld [vmem:[#allocation10 + $0x4] ss:$8 sps:$4 sm:$0xff]  }
  0x86   :  { %703 = vmatprep.subr.bf16.mxu0 %v1305_v58  ;;  %749 = vmatpush2.bf16.msra.mxu1 %v1332_v8  ;;  %v1360_v58 = vld [vmem:[#allocation10] ss:$8 sps:$4 sm:$0xff]   ;;  %v1383_v8 = vld [vmem:[#allocation11 + $0x4] ss:$8 sps:$4 sm:$0xff]  }
  0x87   :  { %750 = vmatprep.subr.bf16.mxu1 %v1333_v9  ;;  %v1381_v9 = vld [vmem:[#allocation11] ss:$8 sps:$4 sm:$0xff]  }
  0x89   :  { %704 = vmatpush2.bf16.msra.mxu0 %v1303_v59  ;;  %v1365_v59 = vld [vmem:[#allocation10 + $0xf4] ss:$8 sps:$4 sm:$0xff]  }
  0x8a   :  { %705 = vmatprep.subr.bf16.mxu0 %v1311_v60  ;;  %751 = vmatpush2.bf16.msra.mxu1 %v1335_v10  ;;  %v1363_v60 = vld [vmem:[#allocation10 + $0xf0] ss:$8 sps:$4 sm:$0xff]   ;;  %v1386_v10 = vld [vmem:[#allocation10 + $0x94] ss:$8 sps:$4 sm:$0xff]  }
  0x8b   :  { %752 = vmatprep.subr.bf16.mxu1 %v1336_v11  ;;  %v1384_v11 = vld [vmem:[#allocation10 + $0x90] ss:$8 sps:$4 sm:$0xff]  }
  0x8d   :  { %706 = vmatpush2.bf16.msra.mxu0 %v1309_v61  ;;  %v1368_v61 = vld [vmem:[#allocation10 + $0xe4] ss:$8 sps:$4 sm:$0xff]  }
  0x8e   :  { %707 = vmatprep.subr.bf16.mxu0 %v1317_v62  ;;  %753 = vmatpush2.bf16.msra.mxu1 %v1338_v12  ;;  %v1366_v62 = vld [vmem:[#allocation10 + $0xe0] ss:$8 sps:$4 sm:$0xff]   ;;  %v765_v12 = vld [vmem:[#allocation5] sm:$0xff] }
  0x8f   :  { %1018 = vmatprep.subr.bf16.mxu1 %v1341_v13  ;;  %v766_v13 = vpack.c.bf16 %v765_v12, %v765_v12 }
  0x91   :  { %708 = vmatpush2.bf16.msra.mxu0 %v1315_v63  ;;  %v1371_v63 = vld [vmem:[#allocation10 + $0xd4] ss:$8 sps:$4 sm:$0xff]  }
  0x92   :  { %709 = vmatprep.subr.bf16.mxu0 %v1323_v0  ;;  %v1369_v0 = vld [vmem:[#allocation10 + $0xd0] ss:$8 sps:$4 sm:$0xff]  }
  0x95   :  { %710 = vmatpush2.bf16.msra.mxu0 %v1321_v3  ;;  %v1372_v3 = vld [vmem:[#allocation10 + $0xc0] ss:$8 sps:$4 sm:$0xff]  }
  0x96   :  { %711 = vmatprep.subr.bf16.mxu0 %v1329_v5  ;;  %v1375_v5 = vld [vmem:[#allocation10 + $0xb0] ss:$8 sps:$4 sm:$0xff]  }
  0x99   :  { %712 = vmatpush2.bf16.msra.mxu0 %v1327_v7  ;;  %v1378_v7 = vld [vmem:[#allocation10 + $0xa0] ss:$8 sps:$4 sm:$0xff]  }
  0x9a   :  { %831 = vmatprep.subr.bf16.mxu0 %v1383_v8 }
 0x114   :  { %v229_v21 = vpop.f32.mrf.mxu0 }
 0x115   :  { %v230_v22 = vadd.f32 %v229_v21, %v134_v19  ;;  %v354_v21 = vrot.slane %v349_v17, %v1623_v16 }
 0x116   :  { %v231_v24 = vpop.f32.mrf.mxu0 }
 0x117   :  { %v232_v25 = vadd.f32 %v231_v24, %v138_v20  ;;  %v277_v27 = vmax.f32 %v230_v22, 0.0 }
 0x118   :  { %v233_v28 = vpop.f32.mrf.mxu0 }
 0x119   :  { %v278_v29 = vmax.f32 %v232_v25, 0.0  ;;  %v281_v34 = vpack.c.bf16 %v277_v27, %v277_v27 }
 0x11a   :  { %v234_v31 = vpop.f32.mrf.mxu0 }
 0x11b   :  { %v282_v32 = vpack.c.bf16 %v278_v29, %v278_v29 }
 0x11c   :  { %v270_v35 = vpop.f32.mrf.mxu0 }
 0x11d   :  { %v271_v36 = vadd.f32 %v270_v35, %v142_v30  ;;  %713 = vmatprep.mubr.bf16.mxu0 %v282_v32 }
 0x11e   :  { %v272_v37 = vpop.f32.mrf.mxu0  ;;  %714 = vmatmul.mubr.bf16.vlgmr.msra.gmra.mxu0 %v281_v34 }
 0x11f   :  { %v273_v38 = vadd.f32 %v272_v37, %v146_v33  ;;  %849 = vmatprep.mubr.bf16.mxu0 %v1528_v1  ;;  %v279_v39 = vmax.f32 %v271_v36, 0.0  ;;  %v1348_v1 = vld [vmem:[#allocation10 + $0x40] ss:$8 sps:$4 sm:$0xff]   ;;  %832 = vmatpush1.bf16.msra.mxu0 %v1381_v9 }
 0x120   :  { %v274_v40 = vpop.f32.mrf.mxu0 }
 0x121   :  { %v280_v41 = vmax.f32 %v273_v38, 0.0  ;;  %v283_v45 = vpack.c.bf16 %v279_v39, %v279_v39 }
 0x122   :  { %v275_v42 = vpop.f32.mrf.mxu0 }
 0x123   :  { %v284_v43 = vpack.c.bf16 %v280_v41, %v280_v41  ;;  %v1059_v41 = vld [vmem:[%s1659_s8] sm:$0x3] }
 0x124   :  { %v1064_v42 = vrot.slane %v1059_v41, %v1623_v16 }
 0x125   :  { %754 = vmatprep.mubr.bf16.mxu1 %v284_v43 }
 0x126   :  { %755 = vmatmul.mubr.bf16.vlgmr.msra.gmra.mxu1 %v283_v45  ;;  %1186 = vmatmul.mubr.msk.bf16.vlgmr.msra.gmra.mxu0 %vm813_vm1, %v766_v13  ;;  %v1068_v45 = vrot.slane %v1059_v41, %v1628_v18 }
 0x127   :  { %1019 = vmatpush1.bf16.msra.mxu1 %v1339_v44 }
 0x128   :  { %1020 = vmatprep.subr.bf16.mxu1 %v1344_v46 }
 0x12b   :  { %1021 = vmatpush1.bf16.msra.mxu1 %v1342_v47  ;;  %v1075_v47 = vld [vmem:[%s1660_s9] sm:$0x3] }
 0x12c   :  { %1022 = vmatprep.subr.bf16.mxu1 %v1347_v48 }
 0x12f   :  { %1023 = vmatpush1.bf16.msra.mxu1 %v1345_v49 }
 0x130   :  { %1024 = vmatprep.subr.bf16.mxu1 %v1350_v50 }
 0x133   :  { %1025 = vmatpush1.bf16.msra.mxu1 %v1348_v1 }
 0x134   :  { %1026 = vmatprep.subr.bf16.mxu1 %v1353_v51 }
 0x137   :  { %1027 = vmatpush1.bf16.msra.mxu1 %v1351_v52  ;;  %v1080_v52 = vrot.slane %v1075_v47, %v1623_v16 }
 0x138   :  { %1028 = vmatprep.subr.bf16.mxu1 %v1356_v53  ;;  %v1084_v53 = vrot.slane %v1075_v47, %v1628_v18 }
 0x13b   :  { %1029 = vmatpush1.bf16.msra.mxu1 %v1354_v54 }
 0x13c   :  { %1030 = vmatprep.subr.bf16.mxu1 %v1359_v55 }
 0x13f   :  { %1031 = vmatpush1.bf16.msra.mxu1 %v1357_v56 }
 0x140   :  { %1032 = vmatprep.subr.bf16.mxu1 %v1362_v57 }
 0x143   :  { %1033 = vmatpush1.bf16.msra.mxu1 %v1360_v58 }
 0x144   :  { %1034 = vmatprep.subr.bf16.mxu1 %v1365_v59  ;;  %v1219_v59 = vld [vmem:[#allocation2] ss:$0 sm:$0xff] }
 0x147   :  { %1035 = vmatpush2.bf16.msra.mxu1 %v1363_v60 }
 0x148   :  { %1036 = vmatprep.subr.bf16.mxu1 %v1368_v61 }
 0x14b   :  { %1037 = vmatpush2.bf16.msra.mxu1 %v1366_v62 }
 0x14c   :  { %1038 = vmatprep.subr.bf16.mxu1 %v1371_v63 }
 0x14f   :  { %1039 = vmatpush2.bf16.msra.mxu1 %v1369_v0 }
 0x150   :  { %1040 = vmatprep.subr.bf16.mxu1 %v1374_v2 }
 0x153   :  { %1041 = vmatpush2.bf16.msra.mxu1 %v1372_v3 }
 0x154   :  { %1042 = vmatprep.subr.bf16.mxu1 %v1377_v4 }
 0x157   :  { %1043 = vmatpush2.bf16.msra.mxu1 %v1375_v5 }
 0x158   :  { %1044 = vmatprep.subr.bf16.mxu1 %v1380_v6 }
 0x15b   :  { %1045 = vmatpush2.bf16.msra.mxu1 %v1378_v7 }
 0x15c   :  { %1046 = vmatprep.subr.bf16.mxu1 %v1386_v10 }
 0x15f   :  { %1047 = vmatpush2.bf16.msra.mxu1 %v1384_v11 }
 0x160   :  { %1048 = vmatprep.subr.bf16.mxu1 %v1389_v14 }
 0x163   :  { %1049 = vmatpush2.bf16.msra.mxu1 %v1387_v15 }
 0x1de   :  { %v715_v19 = vpop.f32.mrf.mxu0 }
 0x1df   :  { %v716_v25 = vadd.f32 %v715_v19, %v354_v21 }
 0x1e0   :  { %v717_v20 = vpop.f32.mrf.mxu0 }
 0x1e1   :  { %v718_v27 = vadd.f32 %v717_v20, %v358_v23 }
 0x1e2   :  { %v719_v22 = vpop.f32.mrf.mxu0 }
 0x1e4   :  { %v720_v24 = vpop.f32.mrf.mxu0 }
 0x1e6   :  { %v756_v26 = vpop.f32.mrf.mxu1  ;;  %v851_v37 = vpop.f32.mrf.mxu0 }
 0x1e7   :  { %v757_v28 = vadd.f32 %v756_v26, %v716_v25 }
 0x1e8   :  { %v758_v29 = vpop.f32.mrf.mxu1  ;;  %v853_v38 = vpop.f32.mrf.mxu0 }
 0x1e9   :  { %v759_v30 = vadd.f32 %v758_v29, %v718_v27  ;;  %v763_v31 = vmax.f32 %v757_v28, 0.0 }
 0x1ea   :  { %v760_v32 = vpop.f32.mrf.mxu1  ;;  %v855_v39 = vpop.f32.mrf.mxu0 }
 0x1eb   :  { %v764_v33 = vmax.f32 %v759_v30, 0.0  ;;  %v767_v36 = vpack.c.bf16 %v763_v31, %v763_v31 }
 0x1ec   :  { %v761_v34 = vpop.f32.mrf.mxu1  ;;  %v856_v40 = vpop.f32.mrf.mxu0 }
 0x1ed   :  { %v768_v35 = vpack.c.bf16 %v764_v33, %v764_v33 }
 0x1ef   :  { %1050 = vmatprep.mubr.bf16.mxu1 %v768_v35 }
 0x1f0   :  { %1051 = vmatmul.mubr.bf16.vlgmr.msra.gmra.mxu1 %v767_v36 }
 0x2b0   :  { %v1052_v43 = vpop.f32.mrf.mxu1 }
 0x2b1   :  { %v1053_v44 = vadd.f32 %v1052_v43, %v851_v37 }
 0x2b2   :  { %v1054_v46 = vpop.f32.mrf.mxu1 }
 0x2b3   :  { %v1071_v48 = vadd.f32 %v1064_v42, %v1053_v44  ;;  %v1055_v49 = vadd.f32 %v1054_v46, %v853_v38 }
 0x2b4   :  { %v1056_v50 = vpop.f32.mrf.mxu1 }
 0x2b5   :  { %v1073_v1 = vmax.f32 %v1071_v48, 0.0  ;;  %v1072_v51 = vadd.f32 %v1068_v45, %v1055_v49 }
 0x2b6   :  { %v1057_v54 = vpop.f32.mrf.mxu1 }
 0x2b7   :  { %v1074_v55 = vmax.f32 %v1072_v51, 0.0  ;;  %v1087_v56 = vmul.f32 %v1080_v52, %v1073_v1 }
 0x2b9   :  { %v1088_v57 = vmul.f32 %v1084_v53, %v1074_v55 }
 0x2bb   :  { %v1089_v58 = vadd.f32 %v1088_v57, %v1087_v56 }
 0x2bd   :  { %1090 = vadd.xlane.f32.xlu0 %v1089_v58 }
 0x346   :  { %v1091_v60 = vpop.xlane.xlu0 %1090 }
 0x347   :  { %v1099_v61 = vadd.f32 %v1219_v59, %v1091_v60 }
 0x349   :  { %1101 = vst.msk [vmem:[%s1662_s11] sm:$0xff] %vm1100_vm2, %v1099_v61 }
 0x34a   :  { %1106 = vsyncpa [#allocation4], 1 }
 0x34b   :  { %1107 = vsyncpa [#allocation6], 1 }
 0x34c   :  { %1108 = vsyncpa [#allocation9], 1 }
 0x34d   :  { %1109 = vsyncpa [#allocation12], 1 }

</bundles_post_ra>
